<compile_context>
chip_gen: v5e
topology: v5e:2x2
jax: 0.10.0
libtpu: 0.0.40
codegen_flags: <defaults>
</compile_context>

<pallas_src>
import numpy as np
import jax
import jax.numpy as jnp
from jax import lax
from jax.experimental import pallas as pl
from jax.experimental.pallas import tpu as pltpu

LANE = 128
SUBLANE = 8
VMEM_LIMIT = 32 * 1024 * 1024   # safe on v5e/v6e/v7x; raises v5e's 16 MiB default


def _round_up(x, m):
    return (x + m - 1) // m * m


def _pooler_tile(sp, max_tile=64):
    # largest multiple of 8 that divides sp, <= max_tile, leaving >= 2 grid
    # steps (so the v7x megacore split over the grid still applies).
    t = min(max_tile, max(SUBLANE, sp // 2))
    t -= t % SUBLANE
    while sp % t:
        t -= SUBLANE
    return t


# ----------------------------------------------------------------------------
# Kernel 1: synthetic BERT pooler  (masked mean over tokens -> dense -> tanh)
#   Masked-out token ids were remapped to an all-zero embedding row on the
#   host, so the masked sum is a plain sum; 1/len arrives precomputed.
#   grid tiles over S (parallel).  Output lanes padded to Dbp, stored bf16.
# ----------------------------------------------------------------------------
def pooler_kernel(tok_ref, inv_ref, w_ref, b_ref, out_ref):
    summed = jnp.sum(tok_ref[...].astype(jnp.float32), axis=1)      # (TS, Db)
    # fold 1/len after the matmul:  (sum/len) @ W == (sum @ W) / len
    pre = jnp.dot(summed.astype(jnp.bfloat16), w_ref[...],
                  preferred_element_type=jnp.float32)                # (TS, Dbp)
    out_ref[...] = jnp.tanh(pre * inv_ref[...] + b_ref[...]).astype(out_ref.dtype)


def bert_pooler_pallas(tok_emb, inv_len, w_pool, b_pool, *, tile_s):
    # tok_emb: (Sp, L, Db) bf16, inv_len: (Sp, 1) f32, Sp % tile_s == 0
    Sp, L, Db = tok_emb.shape
    Dbp = w_pool.shape[1]
    grid = (Sp // tile_s,)
    return pl.pallas_call(
        pooler_kernel,
        out_shape=jax.ShapeDtypeStruct((Sp, Dbp), jnp.bfloat16),
        grid=grid,
        in_specs=[
            pl.BlockSpec((tile_s, L, Db), lambda i: (i, 0, 0)),
            pl.BlockSpec((tile_s, 1), lambda i: (i, 0)),
            pl.BlockSpec((Db, Dbp), lambda i: (0, 0)),
            pl.BlockSpec((1, Dbp), lambda i: (0, 0)),
        ],
        out_specs=pl.BlockSpec((tile_s, Dbp), lambda i: (i, 0)),
        compiler_params=pltpu.CompilerParams(
            dimension_semantics=("parallel",),
            vmem_limit_bytes=VMEM_LIMIT),
    )(tok_emb, inv_len, w_pool, b_pool)


# ----------------------------------------------------------------------------
# Kernel 2: fused  tanh(sentence_emb), bert_emb -> LSTM -> hidden2tag
#   Input projections for ALL timesteps are two big MXU matmuls into a VMEM
#   scratch; the fori_loop recurrence carries only the h @ W_hh matmul and
#   gate elementwise math.  hidden2tag is one batched lane-dense matmul.
#   Grid = batch-row halves (parallel; independent LSTM rows -> 2 TCs on v7x).
# ----------------------------------------------------------------------------
def lstm_tag_kernel(sent_ref, bert_ref, w_s_ref, w_b_ref, w_hh_ref, b_ref,
                    w_tag_ref, b_tag_ref, out_ref, gx_ref, hs_ref):
    T, BN, Hp = hs_ref.shape
    H4p = gx_ref.shape[2]
    Tgp = out_ref.shape[2]

    # ---- input projection for all timesteps (hoisted off the h-chain) ----
    x_s = jnp.tanh(sent_ref[...]).astype(jnp.bfloat16).reshape(T * BN, -1)
    x_b = bert_ref[...].reshape(T * BN, -1)               # bf16 (dropout = id)
    gx = (jnp.dot(x_s, w_s_ref[...], preferred_element_type=jnp.float32)
          + jnp.dot(x_b, w_b_ref[...], preferred_element_type=jnp.float32)
          + b_ref[...])                                    # (T*BN, 4Hp) f32
    gx_ref[...] = gx.reshape(T, BN, H4p)

    def sig(x):  # EUP-friendly sigmoid: one tanh instead of exp + divide
        return 0.5 * jnp.tanh(0.5 * x) + 0.5

    def step(t, carry):
        h, c = carry                                            # (BN, Hp) f32
        gates = gx_ref[t] + jnp.dot(h.astype(jnp.bfloat16), w_hh_ref[...],
                                    preferred_element_type=jnp.float32)
        # gate slices are lane-aligned (Hp multiple of 128); order i,f,g,o
        i_g = sig(gates[:, 0 * Hp:1 * Hp])
        f_g = sig(gates[:, 1 * Hp:2 * Hp])
        g_g = jnp.tanh(gates[:, 2 * Hp:3 * Hp])
        o_g = sig(gates[:, 3 * Hp:4 * Hp])
        c_new = f_g * c + i_g * g_g
        h_new = o_g * jnp.tanh(c_new)
        hs_ref[t] = h_new
        return (h_new, c_new)

    h0 = jnp.zeros((BN, Hp), jnp.float32)
    lax.fori_loop(0, T, step, (h0, h0), unroll=min(T, 4))

    # ---- single batched hidden2tag matmul; lane-dense store ----
    hs = hs_ref[...].reshape(T * BN, Hp).astype(jnp.bfloat16)
    tags = (jnp.dot(hs, w_tag_ref[...], preferred_element_type=jnp.float32)
            + b_tag_ref[...])                                    # (T*BN, Tgp)
    out_ref[...] = tags.reshape(T, BN, Tgp)


def lstm_tag_pallas(sent, bert, w_s_t, w_b_t, w_hh_t, b_gates, w_tag_t, b_tag):
    T, Np, Ds = sent.shape
    Dbp = bert.shape[2]
    Hp, H4p = w_hh_t.shape
    Tgp = w_tag_t.shape[1]
    BN = max(SUBLANE, Np // 2)          # two independent batch halves
    grid = (Np // BN,)                  # -> grid=(2,) : real megacore split
    return pl.pallas_call(
        lstm_tag_kernel,
        out_shape=jax.ShapeDtypeStruct((T, Np, Tgp), jnp.float32),
        grid=grid,
        in_specs=[
            pl.BlockSpec((T, BN, Ds), lambda nb: (0, nb, 0)),
            pl.BlockSpec((T, BN, Dbp), lambda nb: (0, nb, 0)),
            pl.BlockSpec((Ds, H4p), lambda nb: (0, 0)),
            pl.BlockSpec((Dbp, H4p), lambda nb: (0, 0)),
            pl.BlockSpec((Hp, H4p), lambda nb: (0, 0)),
            pl.BlockSpec((1, H4p), lambda nb: (0, 0)),
            pl.BlockSpec((Hp, Tgp), lambda nb: (0, 0)),
            pl.BlockSpec((1, Tgp), lambda nb: (0, 0)),
        ],
        out_specs=pl.BlockSpec((T, BN, Tgp), lambda nb: (0, nb, 0)),
        scratch_shapes=[pltpu.VMEM((T, BN, H4p), jnp.float32),   # gates_x
                        pltpu.VMEM((T, BN, Hp), jnp.float32)],   # h history
        compiler_params=pltpu.CompilerParams(
            dimension_semantics=("parallel",),
            vmem_limit_bytes=VMEM_LIMIT),
    )(sent, bert, w_s_t, w_b_t, w_hh_t, b_gates, w_tag_t, b_tag)


# ----------------------------------------------------------------------------
# One-time parameter preparation (transpose / fuse / pad / bf16-cast)
# ----------------------------------------------------------------------------
def prepare_params(params):
    fourH, Din = params["w_ih"].shape
    H = params["w_hh"].shape[1]
    Db = params["w_pool"].shape[0]
    Ds = Din - Db
    Tg = params["w_tag"].shape[0]
    Hp = _round_up(H, LANE)
    Tgp = _round_up(Tg, LANE)
    Dbp = _round_up(Db, LANE)
    bf16 = jnp.bfloat16

    def pad_gate_rows(w):  # (4H, K) -> (4Hp, K), per-gate zero padding
        K = w.shape[1]
        w = w.reshape(4, H, K)
        w = jnp.pad(w, ((0, 0), (0, Hp - H), (0, 0)))
        return w.reshape(4 * Hp, K)

    w_ih_s = params["w_ih"][:, :Ds]                       # sent half (4H, Ds)
    w_ih_b = params["w_ih"][:, Ds:]                       # bert half (4H, Db)
    w_s_t = pad_gate_rows(w_ih_s).T                       # (Ds, 4Hp)
    w_b_t = jnp.pad(pad_gate_rows(w_ih_b).T, ((0, Dbp - Db), (0, 0)))
    w_hh_t = jnp.pad(pad_gate_rows(params["w_hh"]).T, ((0, Hp - H), (0, 0)))
    b_gates = (params["b_ih"] + params["b_hh"]).reshape(4, H)
    b_gates = jnp.pad(b_gates, ((0, 0), (0, Hp - H))).reshape(1, 4 * Hp)
    w_tag_t = jnp.pad(params["w_tag"].T, ((0, Hp - H), (0, Tgp - Tg)))
    b_tag = jnp.pad(params["b_tag"].reshape(1, Tg), ((0, 0), (0, Tgp - Tg)))
    w_pool = jnp.pad(params["w_pool"], ((0, 0), (0, Dbp - Db)))
    b_pool = jnp.pad(params["b_pool"].reshape(1, Db), ((0, 0), (0, Dbp - Db)))

    # append an all-zero row so masked-out token ids can be remapped to it
    emb = jnp.concatenate(
        [params["emb_table"],
         jnp.zeros((1, Db), params["emb_table"].dtype)], axis=0)

    return dict(
        emb_table=emb.astype(bf16),                 # bf16 gather: half HBM read
        zero_id=params["emb_table"].shape[0],
        w_pool=w_pool.astype(bf16), b_pool=b_pool.astype(jnp.float32),
        w_s_t=w_s_t.astype(bf16), w_b_t=w_b_t.astype(bf16),
        w_hh_t=w_hh_t.astype(bf16), b_gates=b_gates.astype(jnp.float32),
        w_tag_t=w_tag_t.astype(bf16), b_tag=b_tag.astype(jnp.float32),
        tagset=Tg,
    )


# ----------------------------------------------------------------------------
# Full forward (tiny glue in plain JAX, hot path in Pallas)
# ----------------------------------------------------------------------------
def bert_lstm_forward(sentence_emb, input_ids, attention_masks, prep):
    T, N, _ = sentence_emb.shape
    S, L = input_ids.shape

    # pad batch rows once, per doc, so the pooler writes exactly the
    # (T*Np, Dbp) slab the LSTM kernel reads (no activation re-layout between
    # the two kernels).  Np is a multiple of 16 -> 2-way grid split.
    Np = _round_up(N, 2 * SUBLANE)
    Sp = T * Np
    ids = jnp.pad(input_ids.reshape(T, N, L), ((0, 0), (0, Np - N), (0, 0)))
    msk = jnp.pad(attention_masks.reshape(T, N, L),
                  ((0, 0), (0, Np - N), (0, 0))).reshape(Sp, L)
    # masked-out tokens -> all-zero embedding row; 1/len precomputed on host
    ids = jnp.where(msk > 0, ids.reshape(Sp, L), prep["zero_id"])
    inv_len = 1.0 / jnp.maximum(
        msk.sum(axis=1, keepdims=True).astype(jnp.float32), 1.0)     # (Sp, 1)

    tok_emb = prep["emb_table"][ids]                                 # (Sp,L,Db) bf16
    tile_s = _pooler_tile(Sp)
    pooled = bert_pooler_pallas(tok_emb, inv_len, prep["w_pool"],
                                prep["b_pool"], tile_s=tile_s)       # (Sp,Dbp) bf16
    whole = pooled.reshape(T, Np, -1)        # contiguous metadata reshape
    # self.drop(whole_emb): identity in inference mode.

    sent_p = jnp.pad(sentence_emb, ((0, 0), (0, Np - N), (0, 0)))

    tag_p = lstm_tag_pallas(sent_p, whole, prep["w_s_t"], prep["w_b_t"],
                            prep["w_hh_t"], prep["b_gates"],
                            prep["w_tag_t"], prep["b_tag"])          # (T,Np,Tgp)
    return tag_p[:, :N, :prep["tagset"]]


# ----------------------------------------------------------------------------
# Pure-JAX f32 reference (same math) for validation
# ----------------------------------------------------------------------------
def ref_forward(sentence_emb, input_ids, attention_masks, params):
    tok_emb = params["emb_table"][input_ids]
    mask = attention_masks.astype(jnp.float32)
    denom = jnp.maximum(mask.sum(axis=1, keepdims=True), 1.0)
    mean = jnp.einsum("sl,sld->sd", mask, tok_emb) / denom
    pooled = jnp.tanh(mean @ params["w_pool"] + params["b_pool"])
    T, N, _ = sentence_emb.shape
    whole = pooled.reshape(T, N, -1)
    x_seq = jnp.concatenate([jnp.tanh(sentence_emb), whole], axis=-1)
    H = params["w_hh"].shape[1]

    def step(carry, x_t):
        h, c = carry
        gates = (x_t @ params["w_ih"].T + h @ params["w_hh"].T
                 + params["b_ih"] + params["b_hh"])
        i = jax.nn.sigmoid(gates[:, :H])
        f = jax.nn.sigmoid(gates[:, H:2 * H])
        g = jnp.tanh(gates[:, 2 * H:3 * H])
        o = jax.nn.sigmoid(gates[:, 3 * H:])
        c = f * c + i * g
        h = o * jnp.tanh(c)
        return (h, c), h

    init = (jnp.zeros((N, H), jnp.float32), jnp.zeros((N, H), jnp.float32))
    _, hs = jax.lax.scan(step, init, x_seq)
    return hs @ params["w_tag"].T + params["b_tag"]


if __name__ == "__main__":
    NUM_DOCS, SENTS, TOK_LEN = 2, 10, 8          # (module hard-codes 10 / 146)
    SENT_DIM, BERT_DIM, HIDDEN, TAGSET, VOCAB = 16, 32, 32, 5, 64
    S = NUM_DOCS * SENTS

    key = jax.random.PRNGKey(0)
    ks = jax.random.split(key, 12)

    sentence_emb = jax.random.normal(ks[0], (NUM_DOCS, SENTS, SENT_DIM), jnp.float32)
    input_ids = jax.random.randint(ks[1], (S, TOK_LEN), 0, VOCAB)
    lengths = (jnp.arange(S) % TOK_LEN) + 1
    attention_masks = (jnp.arange(TOK_LEN)[None, :] < lengths[:, None]).astype(jnp.int32)

    params = dict(
        emb_table=0.1 * jax.random.normal(ks[2], (VOCAB, BERT_DIM), jnp.float32),
        w_pool=0.1 * jax.random.normal(ks[3], (BERT_DIM, BERT_DIM), jnp.float32),
        b_pool=0.1 * jax.random.normal(ks[4], (1, BERT_DIM), jnp.float32),
        w_ih=0.1 * jax.random.normal(ks[5], (4 * HIDDEN, SENT_DIM + BERT_DIM), jnp.float32),
        w_hh=0.1 * jax.random.normal(ks[6], (4 * HIDDEN, HIDDEN), jnp.float32),
        b_ih=0.1 * jax.random.normal(ks[7], (4 * HIDDEN,), jnp.float32),
        b_hh=0.1 * jax.random.normal(ks[8], (4 * HIDDEN,), jnp.float32),
        w_tag=0.1 * jax.random.normal(ks[9], (TAGSET, HIDDEN), jnp.float32),
        b_tag=0.1 * jax.random.normal(ks[10], (TAGSET,), jnp.float32),
    )

    prep = prepare_params(params)   # one-time transpose/fuse/pad/bf16 cast

    out = bert_lstm_forward(sentence_emb, input_ids, attention_masks, prep)
    out = jax.block_until_ready(out)
    assert out.shape == (NUM_DOCS, SENTS, TAGSET)

    ref = ref_forward(sentence_emb, input_ids, attention_masks, params)
    # bf16 MXU operands / bf16 pooled activations (f32 accumulation) vs f32
    # reference -> loosened tolerance.
    np.testing.assert_allclose(np.asarray(out), np.asarray(ref),
                               atol=2e-2, rtol=2e-2)
    print("KERNEL_OK")
</pallas_src>

<mosaic_0001>
module attributes {stable_mosaic.version = 11 : i64} {
  func.func @pooler_kernel(%arg0: i32, %arg1: memref<16x8x32xbf16, #tpu.memory_space<vmem>>, %arg2: memref<16x1xf32, #tpu.memory_space<vmem>>, %arg3: memref<32x128xbf16, #tpu.memory_space<vmem>>, %arg4: memref<1x128xf32, #tpu.memory_space<vmem>>, %arg5: memref<16x128xbf16, #tpu.memory_space<vmem>>) attributes {dimension_semantics = [#tpu.dimension_semantics<parallel>], iteration_bounds = array<i64: 2>, scalar_prefetch = 0 : i64, scratch_operands = 0 : i64, tpu.core_type = #tpu.core_type<tc>, window_params = [{transform_indices = @transform_0, window_bounds = array<i64: 16, 8, 32>}, {transform_indices = @transform_1, window_bounds = array<i64: 16, 1>}, {pipeline_mode = #tpu.pipeline_mode<synchronous>, transform_indices = @transform_2, window_bounds = array<i64: 32, 128>}, {pipeline_mode = #tpu.pipeline_mode<synchronous>, transform_indices = @transform_3, window_bounds = array<i64: 1, 128>}, {transform_indices = @transform_4, window_bounds = array<i64: 16, 128>}]} {
    %c0 = arith.constant 0 : index
    %c0_0 = arith.constant 0 : index
    %c0_1 = arith.constant 0 : index
    %0 = vector.load %arg1[%c0, %c0_0, %c0_1] : memref<16x8x32xbf16, #tpu.memory_space<vmem>>, vector<16x8x32xbf16>
    %1 = arith.extf %0 : vector<16x8x32xbf16> to vector<16x8x32xf32>
    %cst = arith.constant dense<0.000000e+00> : vector<16x32xf32>
    %2 = vector.multi_reduction <add>, %1, %cst [1] : vector<16x8x32xf32> to vector<16x32xf32>
    %3 = arith.truncf %2 : vector<16x32xf32> to vector<16x32xbf16>
    %c0_2 = arith.constant 0 : index
    %c0_3 = arith.constant 0 : index
    %4 = vector.load %arg3[%c0_2, %c0_3] : memref<32x128xbf16, #tpu.memory_space<vmem>>, vector<32x128xbf16>
    %cst_4 = arith.constant dense<0.000000e+00> : vector<16x128xf32>
    %5 = tpu.matmul %3, %4, %cst_4 {dimension_numbers = #tpu.dot_dimension_numbers<[1], [0], [0], [1], [0, 0, 1, 1], [], []>} : vector<16x32xbf16>, vector<32x128xbf16>, vector<16x128xf32> -> vector<16x128xf32>
    %c0_5 = arith.constant 0 : index
    %c0_6 = arith.constant 0 : index
    %6 = vector.load %arg2[%c0_5, %c0_6] : memref<16x1xf32, #tpu.memory_space<vmem>>, vector<16x1xf32>
    %7 = vector.broadcast %6 : vector<16x1xf32> to vector<16x128xf32>
    %8 = arith.mulf %5, %7 : vector<16x128xf32>
    %c0_7 = arith.constant 0 : index
    %c0_8 = arith.constant 0 : index
    %9 = vector.load %arg4[%c0_7, %c0_8] : memref<1x128xf32, #tpu.memory_space<vmem>>, vector<1x128xf32>
    %10 = vector.broadcast %9 : vector<1x128xf32> to vector<16x128xf32>
    %11 = arith.addf %8, %10 : vector<16x128xf32>
    %12 = math.tanh %11 : vector<16x128xf32>
    %13 = arith.truncf %12 : vector<16x128xf32> to vector<16x128xbf16>
    %c0_9 = arith.constant 0 : index
    %c0_10 = arith.constant 0 : index
    %14 = vector.load %arg5[%c0_9, %c0_10] : memref<16x128xbf16, #tpu.memory_space<vmem>>, vector<16x128xbf16>
    tpu.vector_store %arg5[%c0_9, %c0_10], %13 {strides = array<i32>} : memref<16x128xbf16, #tpu.memory_space<vmem>>, vector<16x128xbf16>,
    return
  }
  func.func @transform_0(%arg0: i32) -> (i32, i32, i32) {
    %c0_i32 = arith.constant 0 : i32
    %c0_i32_0 = arith.constant 0 : i32
    %c0_i32_1 = arith.constant 0 : i32
    return %arg0, %c0_i32, %c0_i32_0 : i32, i32, i32
  }
  func.func @transform_1(%arg0: i32) -> (i32, i32) {
    %c0_i32 = arith.constant 0 : i32
    %c0_i32_0 = arith.constant 0 : i32
    return %arg0, %c0_i32 : i32, i32
  }
  func.func @transform_2(%arg0: i32) -> (i32, i32) {
    %c0_i32 = arith.constant 0 : i32
    %c0_i32_0 = arith.constant 0 : i32
    %c0_i32_1 = arith.constant 0 : i32
    return %c0_i32, %c0_i32_0 : i32, i32
  }
  func.func @transform_3(%arg0: i32) -> (i32, i32) {
    %c0_i32 = arith.constant 0 : i32
    %c0_i32_0 = arith.constant 0 : i32
    %c0_i32_1 = arith.constant 0 : i32
    return %c0_i32, %c0_i32_0 : i32, i32
  }
  func.func @transform_4(%arg0: i32) -> (i32, i32) {
    %c0_i32 = arith.constant 0 : i32
    %c0_i32_0 = arith.constant 0 : i32
    return %arg0, %c0_i32 : i32, i32
  }
}

</mosaic_0001>

<bundles_post_ra>
// kernel: tpu_custom_call.1
= control target key start
LH: loop header
LB: loop body
LE: loop exit
PB: predicated region body
PF: predicated region fallthrough
CT: control target
= control target key end

     0   :  { %9 = vsyncpa [#allocation3], 0  ;;  %s1103_s0 = inlined_call_operand.hbm [shape: bf16[32,8,32], index: 0, kind: input, shape index: {}]   ;;  %s1104_s1 = inlined_call_operand.vmem [shape: f32[32,1], index: 1, kind: input, shape index: {}]   ;;  %s1105_s2 = inlined_call_operand.vmem [shape: bf16[32,128], index: 2, kind: input, shape index: {}]   ;;  %s1106_s3 = inlined_call_operand.vmem [shape: f32[1,128], index: 3, kind: input, shape index: {}]   ;;  %s1107_s4 = inlined_call_operand.hbm [shape: bf16[32,128], index: 4, kind: output, shape index: {}]  }
   0x1   :  { %11 = vsyncpa [#allocation3 + $0x1], 0 }
   0x2   :  { %12 = vsyncpa [#allocation4], 0 }
   0x3   :  { %14 = vsyncpa [#allocation4 + $0x1], 0  ;;  %s876_s15 = smov 0   ;;  %s878_s16 = smov 0  }
   0x4   :  { %s880_s17 = smov 0   ;;  %s882_s18 = smov 0  }
   0x5 LB: > { %s897_s19 = sadd.s32 4294967295, %s844_s18   ;;  %s618_s20 = sadd.s32 4294967294, %s844_s18   ;;  %s844_s18 = sphi %s882_s18, %s1118_s18   ;;  %s840_s17 = sphi %s880_s17, %s1117_s17   ;;  %s836_s16 = sphi %s878_s16, %s1116_s16   ;;  %s832_s15 = sphi %s876_s15, %s1115_s15  }
   0x6   : > { %s901_s21 = sadd.s32 1, %s844_s18   ;;  %s27_s22 = sadd.s32 1, %s840_s17 }
   0x7   : > { %s24_s23 = ssub.s32 %s844_s18, %s901_s21  ;;  %p34_p0 = scmp.ne.s32.totalorder %s840_s17, %s836_s16 }
   0x8   : > { %p25_p1 = scmp.eq.s32.totalorder %s24_s23, 0  ;;  %p35_p2 = scmp.eq.s32.totalorder %s844_s18, 0 }
   0x9   : > { %p40_p3 = scmp.ne.s32.totalorder %s836_s16, %s832_s15  ;;  %p41_p4 = scmp.eq.s32.totalorder %s897_s19, 0 }
   0xa   : > { %s913_s24 = scalar_select %p25_p1, %s840_s17, %s27_s22  }
   0xb   : > { %p915_p5 = por %p35_p2, %p34_p0  ;;  %p919_p6 = por %p41_p4, %p40_p3 }
   0xc   : > { %p132_p7 = scmp.eq.s32.totalorder %s897_s19, 1  ;;  %p138_p8 = scmp.eq.s32.totalorder %s618_s20, 1 }
   0xd   : > { %p703_p10 = scmp.lt.s32.totalorder %s844_s18, 2  ;;  %s164_s29 = sand.u32 1, %s840_s17  }
   0xe   : > { %p926_p11 = por %p132_p7, %p34_p0  ;;  %p930_p12 = por %p138_p8, %p40_p3 }
   0xf   : > { %s643_s30 = sshll.u32 %s844_s18, 6  ;;  %s621_s5 = sshll.u32 %s164_s29, 6 }
  0x10   : > { %s173_s8 = scalar_lea.hbm %s1103_s0, %s643_s30  ;;  %s168_s10 = scalar_lea.vmem [#allocation2], %s621_s5 }
  0x11   : > { %s174_s9 = sshll.u32 %s173_s8, 4  ;;  %s176_s11 = sshll.u32 %s168_s10, 4  ;;  %s175_s9 = int_to_ptr.hbm [resolvable:$true] %s174_s9  ;;  %s177_s11 = int_to_ptr.vmem [resolvable:$true] %s176_s11 }
  0x12   : > { %p941_p13 = pnand %p703_p10, %p915_p5  ;;  %p624_p0 = scmp.ge.s32.totalorder %s844_s18, 1 }
  0x13   : > { %p193_p1 = scmp.lt.s32.totalorder %s844_s18, 3  ;;  %s165_s13 = scalar_lea.sflag [#allocation3], %s164_s29 }
  0x14   : > { %s748_s14 = sshra.s32 %s175_s9, 4  ;;  %p752_p3 = pneg %p941_p13  ;;  %s749_s14 = int_to_ptr.hbm [resolvable:$true] %s748_s14 }
  0x15   : > { %s750_s20 = scalar_lea.hbm %s749_s14, 64  ;;  %s755_s25 = scalar_lea.hbm %s1103_s0, 128 }
  0x16   : > { %p751_p2 = scmp.ne.s32.totalorder %s749_s14, %s750_s20  ;;  %p756_p5 = scmp.lt.s32.totalorder %s749_s14, %s1103_s0 }
  0x17   : > { %p757_p8 = scmp.lt.s32.totalorder %s755_s25, %s750_s20 }
  0x18   : > { %p753_p4 = pnand %p752_p3, %p751_p2 }
  0x19   : > { %p758_p10 = por %p757_p8, %p756_p5 }
  0x1a   : > { %p754_p7 = pneg %p753_p4 }
  0x1c   : > { %p759_p9 = pnand %p758_p10, %p754_p7 }
  0x1e   : > { %762 = shalt.err (!%p759_p9)
}
  0x1f   : > { %s846_s29 = smov 64   ;;  %s847_s6 = smov 4  }
  0x20   : > { %698 = dma.hbm_to_vmem [thread:$0]  (!%p941_p13), %s175_s9, 1024, %s177_s11, %s165_s13, %s846_s29, %s846_s29, %s847_s6  }
  0x21   : > { %p194_p2 = pnand %p624_p0, %p193_p1 }
  0x22   : > { %s962_s7 = sand.u32 (!%p194_p2), 1, %s836_s16  }
  0x23   : > { %197 = sbr.rel (%p194_p2) target bundleno = 243 (0xf3), region = 36  ;;  %s625_s8 = sshll.u32 (!%p194_p2), %s962_s7, 6 }
  0x24   : > { %s200_s10 = scalar_lea.sflag (!%p194_p2), [#allocation3], %s962_s7  ;;  %s966_s14 = scalar_lea.vmem (!%p194_p2), [#allocation2], %s625_s8 }
  0x28   : > { %823 = dma.done.wait (%p919_p6), %s200_s10, 1024  }
  0x29   : > { %825 = vsyncadd (%p919_p6), %s200_s10, 4294966272  ;;  %v645_v0 = vld [vmem:[%s1105_s2 + $0x8] sm:$0xff]  ;;  %v644_v1 = vld [vmem:[%s1105_s2] sm:$0xff]  ;;  %vm275_vm0 = vcmask 261120   ;;  %s627_s26 = sshll.u32 %s897_s19, 1  ;;  %vm440_vm1 = vcmask 1041409  }
  0x2a   : > { %v648_v2 = vld [vmem:[%s966_s14] sm:$0xff]   ;;  %v684_v5 = vld [vmem:[%s966_s14 + $0x8] sm:$0xff]   ;;  %v685_v6 = vld [vmem:[%s966_s14 + $0x10] sm:$0xff]   ;;  %483 = vmatpush.bf16.msra.mxu0 %v645_v0  ;;  %p1033_p6 = scmp.lt.s32.totalorder %s627_s26, 3  ;;  %vm442_vm2 = vcmask 1042434   ;;  %vm444_vm3 = vcmask 1043459  }
  0x2b   : > { %v649_v3 = vunpack.c.l.bf16 %v648_v2  ;;  %v650_v4 = vunpack.c.h.bf16 %v648_v2  ;;  %v686_v7 = vld [vmem:[%s966_s14 + $0x18] sm:$0xff]   ;;  %v653_v8 = vunpack.c.l.bf16 %v684_v5  ;;  %v654_v9 = vunpack.c.h.bf16 %v684_v5  ;;  %v983_v10 = vld [vmem:[%s966_s14 + $0x20] sm:$0xff]   ;;  %v986_v11 = vld [vmem:[%s966_s14 + $0x28] sm:$0xff]   ;;  %s626_s6 = sshll.u32 %s962_s7, 3  ;;  %s646_s8 = sshll.u32 %s897_s19, 3 }
  0x2c   : > { %v989_v12 = vld [vmem:[%s966_s14 + $0x30] sm:$0xff]   ;;  %v657_v13 = vunpack.c.l.bf16 %v685_v6  ;;  %v658_v14 = vunpack.c.h.bf16 %v685_v6  ;;  %v661_v15 = vunpack.c.l.bf16 %v686_v7  ;;  %v662_v16 = vunpack.c.h.bf16 %v686_v7  ;;  %v690_v52 = vld [vmem:[%s966_s14 + $0x38] sm:$0xff]   ;;  %s1120_s26 = smov (!%p1033_p6, %s627_s26), 3  ;;  %s529_s9 = scalar_lea.hbm %s1107_s4, %s646_s8 }
  0x2d   : > { %v665_v17 = vunpack.c.l.bf16 %v983_v10  ;;  %v666_v18 = vunpack.c.h.bf16 %v983_v10  ;;  %v669_v19 = vunpack.c.l.bf16 %v986_v11  ;;  %v670_v20 = vunpack.c.h.bf16 %v986_v11  ;;  %s628_s22 = sshll.u32 %s1120_s26, 3  ;;  %s233_s11 = scalar_lea.vmem [#allocation5], %s626_s6 }
  0x2e   : > { %v673_v21 = vunpack.c.l.bf16 %v989_v12  ;;  %v276_v22 = vsel %vm275_vm0, %v649_v3, 0.0  ;;  %v283_v23 = vsel %vm275_vm0, %v650_v4, 0.0  ;;  %484 = vmatpush.bf16.msra.mxu0 %v644_v1  ;;  %v290_v26 = vsel %vm275_vm0, %v653_v8, 0.0  ;;  %s1057_s30 = scalar_lea.vmem %s1104_s1, %s628_s22  ;;  %s530_s12 = sshll.u32 %s233_s11, 4  ;;  %s531_s12 = int_to_ptr.vmem [resolvable:$true] %s530_s12 }
  0x2f   : > { %v277_v24 = vrot.slane %v276_v22, 4  ;;  %v284_v25 = vrot.slane %v283_v23, 4  ;;  %v297_v27 = vsel %vm275_vm0, %v654_v9, 0.0  ;;  %v291_v28 = vrot.slane %v290_v26, 4  ;;  %s532_s13 = sshll.u32 %s529_s9, 4  ;;  %s518_s26 = scalar_lea.sflag [#allocation4], %s962_s7  ;;  %s533_s13 = int_to_ptr.hbm [resolvable:$true] %s532_s13 }
  0x30   : > { %v298_v29 = vrot.slane %v297_v27, 4  ;;  %v304_v30 = vsel %vm275_vm0, %v657_v13, 0.0  ;;  %v311_v31 = vsel %vm275_vm0, %v658_v14, 0.0  ;;  %v318_v38 = vsel %vm275_vm0, %v661_v15, 0.0  ;;  %s792_s20 = sshra.s32 %s533_s13, 4  ;;  %s798_s25 = scalar_lea.hbm %s1107_s4, 16  ;;  %s793_s20 = int_to_ptr.hbm [resolvable:$true] %s792_s20 }
  0x31   : > { %v278_v32 = vadd.f32 %v277_v24, %v276_v22  ;;  %v285_v33 = vadd.f32 %v284_v25, %v283_v23  ;;  %v305_v34 = vrot.slane %v304_v30, 4  ;;  %v312_v35 = vrot.slane %v311_v31, 4  ;;  %s794_s19 = scalar_lea.hbm %s793_s20, 8  ;;  %p799_p1 = scmp.lt.s32.totalorder %s793_s20, %s1107_s4 }
  0x32   : > { %v292_v36 = vadd.f32 %v291_v28, %v290_v26  ;;  %v299_v37 = vadd.f32 %v298_v29, %v297_v27  ;;  %v325_v39 = vsel %vm275_vm0, %v662_v16, 0.0  ;;  %v319_v46 = vrot.slane %v318_v38, 4  ;;  %p795_p9 = scmp.ne.s32.totalorder %s793_s20, %s794_s19  ;;  %p800_p3 = scmp.lt.s32.totalorder %s798_s25, %s794_s19 }
  0x33   : > { %v279_v40 = vrot.slane %v278_v32, 2  ;;  %v286_v41 = vrot.slane %v285_v33, 2  ;;  %v306_v42 = vadd.f32 %v305_v34, %v304_v30  ;;  %v313_v43 = vadd.f32 %v312_v35, %v311_v31 }
  0x34   : > { %v293_v44 = vrot.slane %v292_v36, 2  ;;  %v300_v45 = vrot.slane %v299_v37, 2  ;;  %v326_v47 = vrot.slane %v325_v39, 4  ;;  %v320_v55 = vadd.f32 %v319_v46, %v318_v38  ;;  %p796_p13 = pnand %p795_p9, %p926_p11  ;;  %p801_p4 = por %p800_p3, %p799_p1 }
  0x35   : > { %v280_v48 = vadd.f32 %v279_v40, %v278_v32  ;;  %v287_v49 = vadd.f32 %v286_v41, %v285_v33  ;;  %v307_v50 = vrot.slane %v306_v42, 2  ;;  %v314_v51 = vrot.slane %v313_v43, 2 }
  0x36   : > { %v294_v53 = vadd.f32 %v293_v44, %v292_v36  ;;  %v301_v54 = vadd.f32 %v300_v45, %v299_v37  ;;  %v327_v56 = vadd.f32 %v326_v47, %v325_v39  ;;  %v321_v63 = vrot.slane %v320_v55, 2  ;;  %p797_p0 = pneg %p796_p13 }
  0x37   : > { %v281_v57 = vrot.slane %v280_v48, 1  ;;  %v288_v58 = vrot.slane %v287_v49, 1  ;;  %v308_v59 = vadd.f32 %v307_v50, %v306_v42  ;;  %v315_v60 = vadd.f32 %v314_v51, %v313_v43 }
  0x38   : > { %v295_v61 = vrot.slane %v294_v53, 1  ;;  %v302_v62 = vrot.slane %v301_v54, 1  ;;  %v328_v0 = vrot.slane %v327_v56, 2  ;;  %v674_v1 = vunpack.c.h.bf16 %v989_v12  ;;  %p802_p7 = pnand %p801_p4, %p797_p0 }
  0x39   : > { %v677_v2 = vunpack.c.l.bf16 %v690_v52  ;;  %v678_v3 = vunpack.c.h.bf16 %v690_v52  ;;  %v309_v4 = vrot.slane %v308_v59, 1  ;;  %v1006_v5 = vadd.f32 %v281_v57, %v280_v48 }
  0x3a   : > { %v1008_v6 = vadd.f32 %v288_v58, %v287_v49  ;;  %v322_v7 = vadd.f32 %v321_v63, %v320_v55  ;;  %v329_v8 = vadd.f32 %v328_v0, %v327_v56  ;;  %v1010_v9 = vadd.f32 %v295_v61, %v294_v53 }
  0x3b   : > { %v316_v10 = vrot.slane %v315_v60, 1  ;;  %v332_v13 = vsel %vm275_vm0, %v665_v17, 0.0  ;;  %v339_v14 = vsel %vm275_vm0, %v666_v18, 0.0  ;;  %v1014_v15 = vadd.f32 %v302_v62, %v301_v54 }
  0x3c   : > { %v1016_v16 = vadd.f32 %v309_v4, %v308_v59  ;;  %v333_v22 = vrot.slane %v332_v13, 4  ;;  %v340_v23 = vrot.slane %v339_v14, 4  ;;  %v346_v24 = vsel %vm275_vm0, %v669_v19, 0.0 }
  0x3d   : > { %v353_v25 = vsel %vm275_vm0, %v670_v20, 0.0  ;;  %v360_v17 = vsel %vm275_vm0, %v673_v21, 0.0  ;;  %v367_v18 = vsel %vm275_vm0, %v674_v1, 0.0  ;;  %v323_v26 = vrot.slane %v322_v7, 1 }
  0x3e   : > { %v330_v27 = vrot.slane %v329_v8, 1  ;;  %v334_v28 = vadd.f32 %v333_v22, %v332_v13  ;;  %v341_v29 = vadd.f32 %v340_v23, %v339_v14  ;;  %v347_v30 = vrot.slane %v346_v24, 4 }
  0x3f   : > { %v354_v31 = vrot.slane %v353_v25, 4  ;;  %v361_v32 = vrot.slane %v360_v17, 4  ;;  %v368_v33 = vrot.slane %v367_v18, 4  ;;  %v374_v11 = vsel %vm275_vm0, %v677_v2, 0.0 }
  0x40   : > { %v335_v34 = vrot.slane %v334_v28, 2  ;;  %v342_v19 = vrot.slane %v341_v29, 2  ;;  %v381_v20 = vsel %vm275_vm0, %v678_v3, 0.0  ;;  %v348_v12 = vadd.f32 %v347_v30, %v346_v24 }
  0x41   : > { %v355_v35 = vadd.f32 %v354_v31, %v353_v25  ;;  %v362_v21 = vadd.f32 %v361_v32, %v360_v17  ;;  %v369_v36 = vadd.f32 %v368_v33, %v367_v18  ;;  %v375_v39 = vrot.slane %v374_v11, 4 }
  0x42   : > { %v336_v37 = vadd.f32 %v335_v34, %v334_v28  ;;  %v343_v38 = vadd.f32 %v342_v19, %v341_v29  ;;  %v382_v40 = vrot.slane %v381_v20, 4  ;;  %v349_v41 = vrot.slane %v348_v12, 2 }
  0x43   : > { %v356_v42 = vrot.slane %v355_v35, 2  ;;  %v363_v43 = vrot.slane %v362_v21, 2  ;;  %v370_v44 = vrot.slane %v369_v36, 2  ;;  %v376_v47 = vadd.f32 %v375_v39, %v374_v11 }
  0x44   : > { %v337_v45 = vrot.slane %v336_v37, 1  ;;  %v344_v46 = vrot.slane %v343_v38, 1  ;;  %v383_v48 = vadd.f32 %v382_v40, %v381_v20  ;;  %v350_v49 = vadd.f32 %v349_v41, %v348_v12 }
  0x45   : > { %v357_v50 = vadd.f32 %v356_v42, %v355_v35  ;;  %v364_v51 = vadd.f32 %v363_v43, %v362_v21  ;;  %v371_v52 = vadd.f32 %v370_v44, %v369_v36  ;;  %v317_v53 = vadd.f32 %v316_v10, %v315_v60  ;;  %v491_v44 = vld [vmem:[%s1057_s30] sm:$0xff] }
  0x46   : > { %v324_v54 = vadd.f32 %v323_v26, %v322_v7  ;;  %v377_v55 = vrot.slane %v376_v47, 2  ;;  %v384_v56 = vrot.slane %v383_v48, 2  ;;  %v351_v57 = vrot.slane %v350_v49, 1 }
  0x47   : > { %v358_v58 = vrot.slane %v357_v50, 1  ;;  %v365_v59 = vrot.slane %v364_v51, 1  ;;  %v372_v61 = vrot.slane %v371_v52, 1  ;;  %v338_v62 = vadd.f32 %v337_v45, %v336_v37 }
  0x48   : > { %v345_v63 = vadd.f32 %v344_v46, %v343_v38  ;;  %v378_v0 = vadd.f32 %v377_v55, %v376_v47  ;;  %v385_v1 = vadd.f32 %v384_v56, %v383_v48  ;;  %v331_v2 = vadd.f32 %v330_v27, %v329_v8 }
  0x49   : > { %v352_v60 = vadd.f32 %v351_v57, %v350_v49  ;;  %v359_v3 = vadd.f32 %v358_v58, %v357_v50  ;;  %v388_v4 = vpack.c.bf16 %v1006_v5, %v1006_v5  ;;  %v366_v7 = vadd.f32 %v365_v59, %v364_v51  ;;  %v492_v59 = vld [vmem:[%s1057_s30 + $0x8] sm:$0xff] }
  0x4a   : > { %v373_v10 = vadd.f32 %v372_v61, %v371_v52  ;;  %v379_v13 = vrot.slane %v378_v0, 1  ;;  %v386_v14 = vrot.slane %v385_v1, 1  ;;  %v389_v22 = vpack.c.bf16 %v1008_v6, %v1008_v6 }
  0x4b   : > { %v390_v8 = vpack.c.bf16 %v1010_v9, %v1010_v9  ;;  %v391_v23 = vpack.c.bf16 %v1014_v15, %v1014_v15  ;;  %v392_v5 = vpack.c.bf16 %v1016_v16, %v1016_v16  ;;  %v396_v17 = vpack.c.bf16 %v338_v62, %v338_v62 }
  0x4c   : > { %v380_v24 = vadd.f32 %v379_v13, %v378_v0  ;;  %v387_v25 = vadd.f32 %v386_v14, %v385_v1  ;;  %v397_v18 = vpack.c.bf16 %v345_v63, %v345_v63  ;;  %v393_v26 = vpack.c.bf16 %v317_v53, %v317_v53  ;;  %v743_v0 = vld [vmem:[%s1106_s3] ss:$0 sm:$0xff] }
  0x4d   : > { %v394_v27 = vpack.c.bf16 %v324_v54, %v324_v54  ;;  %v395_v28 = vpack.c.bf16 %v331_v2, %v331_v2  ;;  %v398_v29 = vpack.c.bf16 %v352_v60, %v352_v60  ;;  %v399_v30 = vpack.c.bf16 %v359_v3, %v359_v3 }
  0x4e   : > { %v400_v6 = vpack.c.bf16 %v366_v7, %v366_v7  ;;  %v401_v31 = vpack.c.bf16 %v373_v10, %v373_v10  ;;  %v402_v32 = vpack.c.bf16 %v380_v24, %v380_v24  ;;  %v403_v9 = vpack.c.bf16 %v387_v25, %v387_v25 }
  0x4f   : > { %v424_v33 = vunpack.c.l.b16 %v388_v4  ;;  %v425_v34 = vunpack.c.l.b16 %v389_v22  ;;  %v426_v15 = vunpack.c.l.b16 %v390_v8  ;;  %v427_v19 = vunpack.c.l.b16 %v391_v23 }
  0x50   : > { %v428_v11 = vunpack.c.l.b16 %v392_v5  ;;  %v432_v16 = vunpack.c.l.b16 %v396_v17  ;;  %v433_v20 = vunpack.c.l.b16 %v397_v18  ;;  %v429_v12 = vunpack.c.l.b16 %v393_v26 }
  0x51   : > { %v430_v35 = vunpack.c.l.b16 %v394_v27  ;;  %v431_v21 = vunpack.c.l.b16 %v395_v28  ;;  %v434_v36 = vunpack.c.l.b16 %v398_v29  ;;  %v435_v37 = vunpack.c.l.b16 %v399_v30 }
  0x52   : > { %v436_v38 = vunpack.c.l.b16 %v400_v6  ;;  %v437_v39 = vunpack.c.l.b16 %v401_v31  ;;  %v441_v40 = vsel %vm440_vm1, %v425_v34, %v424_v33  ;;  %vm446_vm4 = vcmask 1044484  }
  0x53   : > { %v438_v41 = vunpack.c.l.b16 %v402_v32  ;;  %v443_v42 = vsel %vm442_vm2, %v426_v15, %v441_v40  ;;  %vm448_vm5 = vcmask 1045509   ;;  %v454_v43 = vsel %vm440_vm1, %v433_v20, %v432_v16 }
  0x54   : > { %v445_v45 = vsel %vm444_vm3, %v427_v19, %v443_v42  ;;  %vm450_vm6 = vcmask 1046534   ;;  %v455_v46 = vsel %vm442_vm2, %v434_v36, %v454_v43  ;;  %v439_v47 = vunpack.c.l.b16 %v403_v9 }
  0x55   : > { %v447_v48 = vsel %vm446_vm4, %v428_v11, %v445_v45  ;;  %vm452_vm7 = vcmask 1047559   ;;  %v456_v49 = vsel %vm444_vm3, %v435_v37, %v455_v46  ;;  %v848_v50 = vmov 0  }
  0x56   : > { %742 = vset.pattern.permute.xlu0 %v848_v50  ;;  %v449_v51 = vsel %vm448_vm5, %v429_v12, %v447_v48  ;;  %v457_v52 = vsel %vm446_vm4, %v436_v38, %v456_v49 }
  0x57   : > { %495 = vperm.xlu0 %742, %v491_v44   ;;  %v451_v53 = vsel %vm450_vm6, %v430_v35, %v449_v51  ;;  %v458_v54 = vsel %vm448_vm5, %v437_v39, %v457_v52 }
  0x58   : > { %v453_v55 = vsel %vm452_vm7, %v431_v21, %v451_v53  ;;  %v459_v56 = vsel %vm450_vm6, %v438_v41, %v458_v54 }
  0x59   : > { %v460_v57 = vsel %vm452_vm7, %v439_v47, %v459_v56 }
  0x5a   : > { %v461_v58 = vpack.c.b16 %v460_v57, %v453_v55 }
  0x5c   : > { %637 = vmatmul.msk.bf16.vlgmr.msra.gmra.mxu0 %vm275_vm0, %v461_v58 }
  0x5f   : > { %500 = vperm.xlu0 %742, %v492_v59  }
  0xc9   : > { %v496_v61 = vpop.permute.xlu0 %495 }
  0xd1   : > { %v501_v1 = vpop.permute.xlu0 %500 }
  0xd9   : > { %v486_v62 = vpop.f32.mrf.mxu0 }
  0xda   : > { %v503_v63 = vmul.f32 %v496_v61, %v486_v62 }
  0xdc   : > { %v509_v2 = vadd.f32 %v743_v0, %v503_v63 }
  0xde   : > { %744 = vtanh.f32 %v509_v2 }
  0xe1   : > { %v488_v60 = vpop.f32.mrf.mxu0 }
  0xe2   : > { %v504_v3 = vmul.f32 %v501_v1, %v488_v60 }
  0xe4   : > { %v510_v4 = vadd.f32 %v743_v0, %v504_v3  ;;  %v745_v7 = vpop.eup %744 }
  0xe6   : > { %746 = vtanh.f32 %v510_v4 }
  0xec   : > { %v747_v10 = vpop.eup %746 }
  0xed   : > { %v682_v13 = vpack.c.bf16 %v747_v10, %v745_v7 }
  0xef   : > { %683 = vst [vmem:[%s233_s11] sm:$0xff] %v682_v13  }
  0xf0   : > { %805 = shalt.err (!%p802_p7)
}
  0xf1   : > { %s849_s7 = smov 64   ;;  %s850_s29 = smov 4  }
  0xf2   : > { %693 = dma.vmem_to_hbm [thread:$0]  (%p926_p11), %s531_s12, 128, %s533_s13, %s518_s26, %s849_s7, %s849_s7, %s850_s29  }
  0xf3 PF: > { %s547_s6 = sand.u32 1, %s832_s15   ;;  %p1114_p5 = scmp.ge.s32.totalorder %s844_s18, 2 }
  0xf4   : > { %s548_s8 = scalar_lea.sflag [#allocation4], %s547_s6 }
  0xf5   : > { %p700_p8 = pnand %p1114_p5, %p930_p12 }
  0xf7   : > { %p701_p10 = pneg %p700_p8 }
  0xf9   : > { %827 = dma.done.wait (%p701_p10), %s548_s8, 128  }
  0xfa   : > { %829 = vsyncadd (%p701_p10), %s548_s8, 4294967168  ;;  %p17_p2 = scmp.ge.s32.totalorder %s901_s21, 4   ;;  %s1115_s15 = smov %s836_s16 }
  0xfb   : > { %s1116_s16 = smov %s840_s17  ;;  %s1117_s17 = smov %s913_s24 }
  0xfc   : > { %s1118_s18 = smov %s901_s21  ;;  %19 = sbr.rel (!%p17_p2) target bundleno = 5 (0x5), region = 84 }
 0x101   :  { %554 = vsyncpa [#allocation3], 1 }
 0x102   :  { %556 = vsyncpa [#allocation3 + $0x1], 1 }
 0x103   :  { %557 = vsyncpa [#allocation4], 1 }
 0x104   :  { %559 = vsyncpa [#allocation4 + $0x1], 1 }

</bundles_post_ra>
